<compile_context>
chip_gen: v7x
topology: tpu7x:2x2x1
jax: 0.10.0
libtpu: 0.0.40
codegen_flags: <defaults>
</compile_context>

<pallas_src>
import jax
import jax.numpy as jnp
from jax.experimental import pallas as pl
from jax.experimental.pallas import tpu as pltpu

THETA = 9
PAD = (THETA - 1) // 2


def _round_up(x, m):
    return ((x + m - 1) // m) * m


def _band_matrix(n, dtype):
    """(n, n) 0/1 band matrix: 1 where |row - col| <= PAD (clipped box sum)."""
    r = jax.lax.broadcasted_iota(jnp.int32, (n, n), 0)
    c = jax.lax.broadcasted_iota(jnp.int32, (n, n), 1)
    return (jnp.abs(r - c) <= PAD).astype(dtype)


def _distance_loss_kernel(tgt_ref, pred_ref, out_ref):
    si = pl.program_id(1)

    # Output block is resident across the 'arbitrary' (si) axis -> accumulator.
    @pl.when(si == 0)
    def _init():
        out_ref[...] = jnp.zeros_like(out_ref)

    h, w = out_ref.shape
    b = tgt_ref.shape[0]

    # Band matrices generated in-kernel (iota compares): ~(H^2 + W^2) cheap VPU
    # ops per grid step, removes two input streams + their double buffers.
    ah = _band_matrix(h, jnp.bfloat16)   # (H, H)
    bw = _band_matrix(w, jnp.bfloat16)   # (W, W)

    # TODO(synk): for images >~512^2, band-tile the contractions (only the ~9
    # overlapping diagonal blocks) or do the H-pass as 9 sublane-shifted adds
    # from a zero-padded scratch, to keep v5e/v7x mem-bound instead of
    # MXU-bound at O(H+W) MACs/pixel.
    def body(i, carry):
        t = tgt_ref[i]                                   # (H, W) bf16, {0,1}
        p = pred_ref[i].astype(jnp.float32)              # (H, W) f32
        # Separable clipped 9x9 box sum of targets; both passes on the MXU as
        # plain 2-D matmuls (A_h / B_w stay resident as MXU weights).
        y1 = jnp.dot(t, bw, preferred_element_type=jnp.float32)        # (H, W)
        box = jnp.dot(ah, y1.astype(jnp.bfloat16),       # ints <= 9: exact bf16
                      preferred_element_type=jnp.float32)               # (H, W)
        # Binary-target algebra for gt_d*pred + 4*fn:
        #   tgt == 1 -> 4*(1 - pred) ;  tgt == 0 -> (theta^2 - box) * pred
        terms = jnp.where(t > 0,
                          4.0 * (1.0 - p),
                          (float(THETA * THETA) - box) * p)
        out_ref[...] += terms
        return carry

    jax.lax.fori_loop(0, b, body, 0)


def distance_loss(predict, targets, theta=THETA, images_per_step=None,
                  pred_in_bf16=False):
    """Pallas TPU DistanceLoss forward.

    Assumes targets are binary {0, 1} masks (as in the PyTorch usage); c == 1.
    Set pred_in_bf16=True on v5e/v6e for ~33% less HBM traffic if ~0.4%
    relative error is acceptable.
    """
    assert theta == THETA
    n, c, H, W = predict.shape
    assert c == 1, "DistanceLoss conv weight is [1,1,theta,theta]; requires c == 1"
    nc = n * c

    # Pad spatial dims so blocks are sublane/lane dense.  Zero rows/cols are
    # mathematically inert: pred = 0 there, and zero targets reproduce the
    # conv's zero padding for the original pixels.
    H_p = _round_up(H, 8)
    W_p = _round_up(W, 128)

    pred_dtype = jnp.bfloat16 if pred_in_bf16 else jnp.float32
    pred = predict.reshape(nc, H, W).astype(pred_dtype)
    tgt = targets.reshape(nc, H, W).astype(jnp.bfloat16)   # exact for {0,1}
    if (H_p, W_p) != (H, W):
        spad = ((0, 0), (0, H_p - H), (0, W_p - W))
        pred = jnp.pad(pred, spad)
        tgt = jnp.pad(tgt, spad)

    # --- Per-generation VMEM budget (v5e/v6e: 128 MiB, v7x: 64 MiB) ---------
    try:
        info = pltpu.get_tpu_info()
        vmem_cap = int(getattr(info, "vmem_capacity_bytes", 64 * 1024 * 1024))
    except Exception:  # not on TPU / query unavailable: assume v7x-sized VMEM
        vmem_cap = 64 * 1024 * 1024

    stream_bytes_per_pix = 2 + (2 if pred_in_bf16 else 4)       # tgt + pred
    per_img = H_p * W_p * stream_bytes_per_pix * 2               # double-buffered
    # resident: accumulator (x2 bufs), band matrices, per-image f32 slabs
    fixed = (2 * H_p * W_p * 4
             + 2 * (H_p * H_p + W_p * W_p)
             + 6 * H_p * W_p * 4)

    if images_per_step is None:
        budget = int(0.40 * vmem_cap)
        images_per_step = max(1, min(nc, (budget - fixed) // per_img))
    B = int(images_per_step)

    num_steps = (nc + B - 1) // B
    # Always feed both v7x TensorCores: pad the step count to even (extra zero
    # images contribute exactly 0).  Harmless (sequential) on 1-TC v5e/v6e.
    if num_steps > 1 and num_steps % 2:
        num_steps += 1
    P = 2 if num_steps > 1 else 1
    S = num_steps // P

    nc_pad = num_steps * B
    if nc_pad != nc:
        padw = ((0, nc_pad - nc), (0, 0), (0, 0))
        pred = jnp.pad(pred, padw)
        tgt = jnp.pad(tgt, padw)

    usage = fixed + per_img * B + (4 << 20)
    vmem_limit = int(min(max(usage, 32 << 20), int(vmem_cap * 0.9)))

    partial = pl.pallas_call(
        _distance_loss_kernel,
        out_shape=jax.ShapeDtypeStruct((P, H_p, W_p), jnp.float32),
        grid_spec=pltpu.PrefetchScalarGridSpec(
            num_scalar_prefetch=0,
            grid=(P, S),
            in_specs=[
                pl.BlockSpec((B, H_p, W_p), lambda pi, si: (pi * S + si, 0, 0)),
                pl.BlockSpec((B, H_p, W_p), lambda pi, si: (pi * S + si, 0, 0)),
            ],
            out_specs=pl.BlockSpec((None, H_p, W_p), lambda pi, si: (pi, 0, 0)),
        ),
        compiler_params=pltpu.CompilerParams(
            dimension_semantics=("parallel", "arbitrary"),
            vmem_limit_bytes=vmem_limit),
    )(tgt, pred)

    # Final H/W/P reductions + mean over (n, c) once, outside the kernel.
    return jnp.sum(partial) / nc


def distance_loss_ref(predict, targets, theta=THETA):
    """Pure-JAX reference mirroring the PyTorch forward."""
    n, c, H, W = predict.shape
    p = (theta - 1) // 2
    t_p = jnp.pad(targets.astype(jnp.float32),
                  ((0, 0), (0, 0), (p, p), (p, p)))
    kernel = jnp.ones((1, 1, theta, theta), jnp.float32)
    gt_d = jax.lax.conv_general_dilated(
        1.0 - t_p, kernel, window_strides=(1, 1), padding="VALID",
        dimension_numbers=("NCHW", "OIHW", "NCHW"))
    gt_d = gt_d * (1.0 - targets)
    fn = (1.0 - predict) * targets
    fp = gt_d * predict
    return jnp.mean(jnp.sum((fp + 4.0 * fn).reshape(n, c, -1), axis=2))


if __name__ == "__main__":
    key = jax.random.PRNGKey(0)
    k1, k2 = jax.random.split(key)
    n, c, H, W = 8, 1, 16, 16   # c must be 1 (conv weight is [1,1,theta,theta])
    predict = jax.nn.sigmoid(jax.random.normal(k1, (n, c, H, W), jnp.float32))
    targets = (jax.random.uniform(k2, (n, c, H, W)) > 0.7).astype(jnp.float32)

    ref = distance_loss_ref(predict, targets)

    # Small images_per_step: exercises both grid axes (P=2 parallel + S=2 accum).
    loss_small = distance_loss(predict, targets, images_per_step=2)
    jax.block_until_ready(loss_small)
    assert jnp.allclose(loss_small, ref, rtol=1e-5, atol=1e-4), (loss_small, ref)

    # Default auto-sized blocks (single step, P=1 path).
    loss_auto = distance_loss(predict, targets)
    jax.block_until_ready(loss_auto)
    assert jnp.allclose(loss_auto, ref, rtol=1e-5, atol=1e-4), (loss_auto, ref)

    print("KERNEL_OK")
</pallas_src>

<mosaic_0001>
module attributes {stable_mosaic.version = 11 : i64} {
  func.func @_distance_loss_kernel(%arg0: i32, %arg1: i32, %arg2: memref<2x16x128xbf16, #tpu.memory_space<vmem>>, %arg3: memref<2x16x128xf32, #tpu.memory_space<vmem>>, %arg4: memref<1x16x128xf32, #tpu.memory_space<vmem>>) attributes {dimension_semantics = [#tpu.dimension_semantics<parallel>, #tpu.dimension_semantics<arbitrary>], iteration_bounds = array<i64: 2, 2>, scalar_prefetch = 0 : i64, scratch_operands = 0 : i64, tpu.core_type = #tpu.core_type<tc>, window_params = [{transform_indices = @transform_0, window_bounds = array<i64: 2, 16, 128>}, {transform_indices = @transform_1, window_bounds = array<i64: 2, 16, 128>}, {transform_indices = @transform_2, window_bounds = array<i64: 1, 16, 128>}]} {
    %c0_i32 = arith.constant 0 : i32
    %0 = arith.cmpi eq, %arg1, %c0_i32 : i32
    %1 = arith.extui %0 : i1 to i32
    %c0_i32_0 = arith.constant 0 : i32
    %2 = arith.cmpi ne, %1, %c0_i32_0 : i32
    scf.if %2 {
      %cst = arith.constant 0.000000e+00 : f32
      %22 = vector.broadcast %cst : f32 to vector<16x128xf32>
      %c0 = arith.constant 0 : index
      %c0_4 = arith.constant 0 : index
      %c0_5 = arith.constant 0 : index
      %23 = vector.load %arg4[%c0, %c0_4, %c0_5] : memref<1x16x128xf32, #tpu.memory_space<vmem>>, vector<1x16x128xf32>
      %24 = vector.shape_cast %23 : vector<1x16x128xf32> to vector<16x128xf32>
      %25 = vector.shape_cast %22 : vector<16x128xf32> to vector<1x16x128xf32>
      tpu.vector_store %arg4[%c0, %c0_4, %c0_5], %25 {strides = array<i32>} : memref<1x16x128xf32, #tpu.memory_space<vmem>>, vector<1x16x128xf32>,
    } else {
    }
    %3 = tpu.iota {dimensions = array<i32: 0>} : vector<16x16xi32>
    %4 = tpu.iota {dimensions = array<i32: 1>} : vector<16x16xi32>
    %5 = arith.subi %3, %4 : vector<16x16xi32>
    %6 = math.absi %5 : vector<16x16xi32>
    %c4_i32 = arith.constant 4 : i32
    %7 = vector.broadcast %c4_i32 : i32 to vector<16x16xi32>
    %8 = arith.cmpi sle, %6, %7 : vector<16x16xi32>
    %9 = arith.extui %8 : vector<16x16xi1> to vector<16x16xi32>
    %10 = arith.sitofp %9 : vector<16x16xi32> to vector<16x16xf32>
    %11 = arith.truncf %10 : vector<16x16xf32> to vector<16x16xbf16>
    %12 = tpu.iota {dimensions = array<i32: 0>} : vector<128x128xi32>
    %13 = tpu.iota {dimensions = array<i32: 1>} : vector<128x128xi32>
    %14 = arith.subi %12, %13 : vector<128x128xi32>
    %15 = math.absi %14 : vector<128x128xi32>
    %c4_i32_1 = arith.constant 4 : i32
    %16 = vector.broadcast %c4_i32_1 : i32 to vector<128x128xi32>
    %17 = arith.cmpi sle, %15, %16 : vector<128x128xi32>
    %18 = arith.extui %17 : vector<128x128xi1> to vector<128x128xi32>
    %19 = arith.sitofp %18 : vector<128x128xi32> to vector<128x128xf32>
    %20 = arith.truncf %19 : vector<128x128xf32> to vector<128x128xbf16>
    %c0_i32_2 = arith.constant 0 : i32
    %c2_i32 = arith.constant 2 : i32
    %21 = arith.addi %c0_i32_2, %c2_i32 : i32
    %c1_i32 = arith.constant 1 : i32
    scf.for %arg5 = %c0_i32_2 to %21 step %c1_i32  : i32 {
      %22 = arith.index_cast %arg5 : i32 to index
      %c0 = arith.constant 0 : index
      %c0_4 = arith.constant 0 : index
      %23 = vector.load %arg2[%22, %c0, %c0_4] : memref<2x16x128xbf16, #tpu.memory_space<vmem>>, vector<1x16x128xbf16>
      %24 = vector.shape_cast %23 : vector<1x16x128xbf16> to vector<16x128xbf16>
      %25 = arith.index_cast %arg5 : i32 to index
      %c0_5 = arith.constant 0 : index
      %c0_6 = arith.constant 0 : index
      %26 = vector.load %arg3[%25, %c0_5, %c0_6] : memref<2x16x128xf32, #tpu.memory_space<vmem>>, vector<1x16x128xf32>
      %27 = vector.shape_cast %26 : vector<1x16x128xf32> to vector<16x128xf32>
      %cst = arith.constant dense<0.000000e+00> : vector<16x128xf32>
      %28 = tpu.matmul %24, %20, %cst {dimension_numbers = #tpu.dot_dimension_numbers<[1], [0], [0], [1], [0, 0, 1, 1], [], []>} : vector<16x128xbf16>, vector<128x128xbf16>, vector<16x128xf32> -> vector<16x128xf32>
      %29 = arith.truncf %28 : vector<16x128xf32> to vector<16x128xbf16>
      %cst_7 = arith.constant dense<0.000000e+00> : vector<16x128xf32>
      %30 = tpu.matmul %11, %29, %cst_7 {dimension_numbers = #tpu.dot_dimension_numbers<[1], [0], [0], [1], [0, 0, 1, 1], [], []>} : vector<16x16xbf16>, vector<16x128xbf16>, vector<16x128xf32> -> vector<16x128xf32>
      %cst_8 = arith.constant 0.000000e+00 : bf16
      %31 = vector.broadcast %cst_8 : bf16 to vector<16x128xbf16>
      %32 = arith.cmpf ogt, %24, %31 : vector<16x128xbf16>
      %cst_9 = arith.constant 1.000000e+00 : f32
      %33 = vector.broadcast %cst_9 : f32 to vector<16x128xf32>
      %34 = arith.subf %33, %27 : vector<16x128xf32>
      %cst_10 = arith.constant 4.000000e+00 : f32
      %35 = vector.broadcast %cst_10 : f32 to vector<16x128xf32>
      %36 = arith.mulf %35, %34 : vector<16x128xf32>
      %cst_11 = arith.constant 8.100000e+01 : f32
      %37 = vector.broadcast %cst_11 : f32 to vector<16x128xf32>
      %38 = arith.subf %37, %30 : vector<16x128xf32>
      %39 = arith.mulf %38, %27 : vector<16x128xf32>
      %40 = arith.select %32, %36, %39 : vector<16x128xi1>, vector<16x128xf32>
      %c0_12 = arith.constant 0 : index
      %c0_13 = arith.constant 0 : index
      %c0_14 = arith.constant 0 : index
      %41 = vector.load %arg4[%c0_12, %c0_13, %c0_14] : memref<1x16x128xf32, #tpu.memory_space<vmem>>, vector<1x16x128xf32>
      %42 = vector.shape_cast %41 : vector<1x16x128xf32> to vector<16x128xf32>
      %43 = arith.addf %42, %40 : vector<16x128xf32>
      %c0_15 = arith.constant 0 : index
      %c0_16 = arith.constant 0 : index
      %c0_17 = arith.constant 0 : index
      %44 = vector.load %arg4[%c0_15, %c0_16, %c0_17] : memref<1x16x128xf32, #tpu.memory_space<vmem>>, vector<1x16x128xf32>
      %45 = vector.shape_cast %44 : vector<1x16x128xf32> to vector<16x128xf32>
      %46 = vector.shape_cast %43 : vector<16x128xf32> to vector<1x16x128xf32>
      tpu.vector_store %arg4[%c0_15, %c0_16, %c0_17], %46 {strides = array<i32>} : memref<1x16x128xf32, #tpu.memory_space<vmem>>, vector<1x16x128xf32>,
    }
    %c2_i32_3 = arith.constant 2 : i32
    return
  }
  func.func @transform_0(%arg0: i32, %arg1: i32) -> (i32, i32, i32) {
    %c2_i32 = arith.constant 2 : i32
    %0 = arith.muli %arg0, %c2_i32 : i32
    %1 = arith.addi %0, %arg1 : i32
    %c0_i32 = arith.constant 0 : i32
    %c0_i32_0 = arith.constant 0 : i32
    %c0_i32_1 = arith.constant 0 : i32
    return %1, %c0_i32, %c0_i32_0 : i32, i32, i32
  }
  func.func @transform_1(%arg0: i32, %arg1: i32) -> (i32, i32, i32) {
    %c2_i32 = arith.constant 2 : i32
    %0 = arith.muli %arg0, %c2_i32 : i32
    %1 = arith.addi %0, %arg1 : i32
    %c0_i32 = arith.constant 0 : i32
    %c0_i32_0 = arith.constant 0 : i32
    %c0_i32_1 = arith.constant 0 : i32
    return %1, %c0_i32, %c0_i32_0 : i32, i32, i32
  }
  func.func @transform_2(%arg0: i32, %arg1: i32) -> (i32, i32, i32) {
    %c0_i32 = arith.constant 0 : i32
    %c0_i32_0 = arith.constant 0 : i32
    %c0_i32_1 = arith.constant 0 : i32
    return %arg0, %c0_i32, %c0_i32_0 : i32, i32, i32
  }
}

</mosaic_0001>

<bundles_post_ra>
// kernel: tpu_custom_call.1
= control target key start
LH: loop header
LB: loop body
LE: loop exit
PB: predicated region body
PF: predicated region fallthrough
CT: control target
= control target key end

     0   :  { %s1523_s0 = inlined_call_operand.hbm [shape: bf16[8,16,128], index: 0, kind: input, shape index: {}]   ;;  %s1524_s1 = inlined_call_operand.hbm [shape: f32[8,16,128], index: 1, kind: input, shape index: {}]   ;;  %s1525_s2 = inlined_call_operand.hbm [shape: f32[2,16,128], index: 2, kind: output, shape index: {}]  }
   0x1   :  { %1534 = sst [smem:[#allocation15_spill]] %s1523_s0 }
   0x2   :  { %7 = vsyncpa [#allocation3], 0 }
   0x3   :  { %9 = vsyncpa [#allocation3 + $0x1], 0 }
   0x4   :  { %10 = vsyncpa [#allocation6], 0 }
   0x5   :  { %12 = vsyncpa [#allocation6 + $0x1], 0 }
   0x6   :  { %13 = vsyncpa [#allocation4], 0 }
   0x7   :  { %15 = vsyncpa [#allocation4 + $0x1], 0  ;;  %s1126_s9 = smov 0   ;;  %s1128_s10 = smov 0  }
   0x8   :  { %s1130_s11 = smov 0   ;;  %s1132_s12 = smov 0  }
   0x9   :  { %s1134_s13 = smov 0   ;;  %s1136_s14 = smov 0  }
   0xa   :  { %s1138_s15 = smov 0   ;;  %s1140_s16 = smov 0  }
   0xb   :  { %s1142_s17 = smov 0   ;;  %s1144_s18 = smov 0  }
   0xc   :  { %s1146_s19 = smov 0  }
   0xd LB: > { %1535 = sst [smem:[#allocation11_spill]] %s1082_s17  ;;  %s648_s20 = sadd.s32 4294967295, %s1090_s19   ;;  %s1090_s19 = sphi %s1146_s19, %s21_s19   ;;  %s1086_s18 = sphi %s1144_s18, %s1557_s18   ;;  %s1082_s17 = sphi %s1142_s17, %s1556_s17   ;;  %s1078_s16 = sphi %s1140_s16, %s1555_s16   ;;  %s1074_s15 = sphi %s1138_s15, %s1554_s15   ;;  %s1070_s14 = sphi %s1136_s14, %s1563_s14   ;;  %s1066_s13 = sphi %s1134_s13, %s1562_s13   ;;  %s1062_s12 = sphi %s1132_s12, %s1561_s12   ;;  %s1058_s11 = sphi %s1130_s11, %s1560_s11   ;;  %s1054_s10 = sphi %s1128_s10, %s1559_s10   ;;  %s1050_s9 = sphi %s1126_s9, %s1558_s9  }
   0xe   : > { %1536 = sst [smem:[#allocation12_spill]] %s1086_s18  ;;  %s649_s21 = sadd.s32 4294967294, %s1090_s19  }
   0xf   : > { %s30_s22 = sadd.s32 1, %s1082_s17  ;;  %s33_s23 = sadd.s32 1, %s1086_s18 }
  0x10   : > { %p31_p0 = scmp.ge.s32.totalorder %s30_s22, 2  ;;  %s650_s24 = sshll.u32 %s1086_s18, 1 }
  0x11   : > { %s1185_s25 = sadd.s32 %s1082_s17, %s650_s24  ;;  %s44_s26 = sadd.s32 1, %s1070_s14 }
  0x12   : > { %s1565_s22 = smov (%p31_p0, %s30_s22), 0  ;;  %s1567_s23 = smov (!%p31_p0, %s33_s23), %s1086_s18 }
  0x13   : > { %1537 = sst [smem:[#allocation13_spill]] %s1565_s22  ;;  %p51_p1 = scmp.ne.s32.totalorder %s1070_s14, %s1066_s13 }
  0x14   : > { %p52_p2 = scmp.eq.s32.totalorder %s1090_s19, 0  ;;  %p35_p3 = scmp.ge.s32.totalorder %s1567_s23, 2 }
  0x15   : > { %p57_p4 = scmp.ne.s32.totalorder %s1066_s13, %s1062_s12  ;;  %p58_p6 = scmp.eq.s32.totalorder %s648_s20, 0 }
  0x16   : > { %p1195_p5 = por %p52_p2, %p51_p1  ;;  %s1569_s23 = smov (%p35_p3, %s1567_s23), 0 }
  0x17   : > { %1539 = sst [smem:[#allocation14_spill]] %s1569_s23  ;;  %p1201_p7 = por %p58_p6, %p57_p4 }
  0x18   : > { %s100_s29 = sadd.s32 1, %s1058_s11  ;;  %s651_s30 = sshll.u32 %s1569_s23, 1 }
  0x19   : > { %s1540_s28 = scalar_select %p1201_p7, 1, 0 }
  0x1a   : > { %s97_s3 = ssub.s32 %s1086_s18, %s1569_s23  ;;  %s40_s4 = sadd.s32 %s651_s30, %s1565_s22 }
  0x1b   : > { %p98_p8 = scmp.eq.s32.totalorder %s97_s3, 0  ;;  %s41_s5 = ssub.s32 %s1185_s25, %s40_s4 }
  0x1c   : > { %p110_p9 = scmp.ne.s32.totalorder %s1058_s11, %s1054_s10  ;;  %p42_p10 = scmp.eq.s32.totalorder %s41_s5, 0 }
  0x1d   : > { %p111_p11 = scmp.eq.s32.totalorder %s648_s20, 3  ;;  %p116_p13 = scmp.ne.s32.totalorder %s1054_s10, %s1050_s9 }
  0x1e   : > { %s1214_s6 = scalar_select %p98_p8, %s1058_s11, %s100_s29  }
  0x1f   : > { %s1217_s7 = scalar_select %p42_p10, %s1070_s14, %s44_s26  }
  0x20   : > { %p1219_p12 = por %p111_p11, %p110_p9  ;;  %p117_p0 = scmp.eq.s32.totalorder %s649_s21, 3 }
  0x21   : > { %p789_p1 = scmp.lt.s32.totalorder %s1090_s19, 4  ;;  %s1229_s12 = sand.u32 1, %s1070_s14  }
  0x22   : > { %s1541_s8 = scalar_select %p1219_p12, 1, 0 }
  0x23   : > { %p1231_p2 = por %p117_p0, %p116_p13  ;;  %s656_s20 = sshll.u32 %s1229_s12, 4 }
  0x24   : > { %s730_s29 = sshll.u32 %s1185_s25, 8  ;;  %s1543_s0 = sld [smem:[#allocation15_spill]] }
  0x25   : > { %s1542_s24 = scalar_select %p1231_p2, 1, 0 }
  0x26   : > { %s141_s21 = scalar_lea.vmem [#allocation2], %s656_s20  ;;  %p1244_p3 = pnand %p789_p1, %p1195_p5 }
  0x27   : > { %s151_s4 = sshll.u32 %s141_s21, 4  ;;  %s138_s23 = scalar_lea.sflag [#allocation3], %s1229_s12  ;;  %s1248_s4 = int_to_ptr.vmem [resolvable:$true] %s151_s4 }
  0x28   : > { %p902_p6 = pneg %p1244_p3 }
  0x2a   : > { %s1240_s3 = scalar_lea.hbm %s1543_s0, %s730_s29  ;;  %s905_s27 = scalar_lea.hbm %s1543_s0, 1024 }
  0x2b   : > { %s900_s22 = scalar_lea.hbm %s1240_s3, 256  ;;  %p906_p5 = scmp.lt.u32.totalorder %s1240_s3, %s1543_s0 }
  0x2c   : > { %p901_p4 = scmp.ne.s32.totalorder %s1240_s3, %s900_s22  ;;  %p907_p10 = scmp.lt.u32.totalorder %s905_s27, %s900_s22 }
  0x2d   : > { %p909_p13 = scmp.lt.u32.totalorder %s900_s22, %s1240_s3 }
  0x2e   : > { %p903_p8 = pnand %p902_p6, %p901_p4  ;;  %p908_p11 = por %p907_p10, %p906_p5 }
  0x30   : > { %p904_p9 = pneg %p903_p8  ;;  %p910_p0 = por %p909_p13, %p908_p11 }
  0x32   : > { %p911_p1 = pnand %p910_p0, %p904_p9 }
  0x34   : > { %914 = shalt.err (!%p911_p1)
}
  0x35   : > { %s915_s21 = scalar_lea.vmem %s1248_s4, 256  ;;  %s1096_s20 = smov [#allocation2]  }
  0x36   : > { %p916_p4 = scmp.ne.s32.totalorder %s1248_s4, %s915_s21  ;;  %s920_s29 = sshll.u32 %s1096_s20, 4  ;;  %s921_s29 = int_to_ptr.vmem [resolvable:$false] %s920_s29 }
  0x37   : > { %s922_s26 = scalar_lea.vmem %s921_s29, 512  ;;  %p923_p12 = scmp.lt.s32.totalorder %s1248_s4, %s921_s29 }
  0x38   : > { %p918_p8 = pnand %p916_p4, %p902_p6  ;;  %p924_p5 = scmp.lt.s32.totalorder %s922_s26, %s915_s21 }
  0x3a   : > { %p919_p2 = pneg %p918_p8  ;;  %p925_p10 = por %p924_p5, %p923_p12 }
  0x3c   : > { %p926_p11 = pnand %p925_p10, %p919_p2 }
  0x3e   : > { %929 = shalt.err (!%p926_p11)
}
  0x3f   : > { %s1097_s22 = smov 64   ;;  %s1098_s27 = smov 4  }
  0x40   : > { %781 = dma.hbm_to_vmem [thread:$0]  (!%p1244_p3), %s1240_s3, 256, %s1248_s4, %s138_s23, %s1097_s22, %s1097_s22, %s1098_s27  }
  0x41   : > { %p666_p9 = scmp.ge.s32.totalorder %s1090_s19, 1  ;;  %p183_p13 = scmp.lt.s32.totalorder %s1090_s19, 5 }
  0x42   : > { %s661_s30 = sshll.u32 %s1229_s12, 5  ;;  %s732_s20 = sshll.u32 %s1185_s25, 9 }
  0x43   : > { %p1281_p12 = pnand %p666_p9, %p183_p13  ;;  %s165_s29 = scalar_lea.vmem [#allocation5], %s661_s30 }
  0x44   : > { %s175_s26 = sshll.u32 %s165_s29, 4  ;;  %s1289_s17 = scalar_lea.hbm %s1524_s1, %s732_s20  ;;  %s1291_s26 = int_to_ptr.vmem [resolvable:$true] %s175_s26 }
  0x45   : > { %s162_s23 = scalar_lea.sflag [#allocation6], %s1229_s12  ;;  %s930_s3 = scalar_lea.hbm %s1289_s17, 512 }
  0x46   : > { %p931_p2 = scmp.ne.s32.totalorder %s1289_s17, %s930_s3  ;;  %s935_s22 = scalar_lea.hbm %s1524_s1, 2048 }
  0x47   : > { %p936_p4 = scmp.lt.u32.totalorder %s1289_s17, %s1524_s1  ;;  %p937_p8 = scmp.lt.u32.totalorder %s935_s22, %s930_s3 }
  0x48   : > { %p933_p0 = pnand %p931_p2, %p902_p6  ;;  %p939_p10 = scmp.lt.u32.totalorder %s930_s3, %s1289_s17 }
  0x49   : > { %p938_p5 = por %p937_p8, %p936_p4 }
  0x4a   : > { %p934_p1 = pneg %p933_p0 }
  0x4b   : > { %p940_p11 = por %p939_p10, %p938_p5 }
  0x4d   : > { %p941_p9 = pnand %p940_p11, %p934_p1 }
  0x4f   : > { %944 = shalt.err (!%p941_p9)
}
  0x50   : > { %s945_s27 = scalar_lea.vmem %s1291_s26, 512  ;;  %s1099_s30 = smov [#allocation5]  }
  0x51   : > { %p946_p13 = scmp.ne.s32.totalorder %s1291_s26, %s945_s27  ;;  %s950_s20 = sshll.u32 %s1099_s30, 4  ;;  %s951_s20 = int_to_ptr.vmem [resolvable:$false] %s950_s20 }
  0x52   : > { %s952_s29 = scalar_lea.vmem %s951_s20, 1024  ;;  %p953_p7 = scmp.lt.s32.totalorder %s1291_s26, %s951_s20 }
  0x53   : > { %p948_p2 = pnand %p946_p13, %p902_p6  ;;  %p954_p4 = scmp.lt.s32.totalorder %s952_s29, %s945_s27 }
  0x55   : > { %p949_p0 = pneg %p948_p2  ;;  %p955_p8 = por %p954_p4, %p953_p7 }
  0x57   : > { %p956_p5 = pnand %p955_p8, %p949_p0 }
  0x59   : > { %959 = shalt.err (!%p956_p5)
}
  0x5a   : > { %s1100_s3 = smov 128   ;;  %s1101_s25 = smov 8  }
  0x5b   : > { %784 = dma.hbm_to_vmem [thread:$0]  (!%p1244_p3), %s1289_s17, 512, %s1291_s26, %s162_s23, %s1100_s3, %s1100_s3, %s1101_s25  }
  0x5c   : > { %187 = sbr.rel (%p1281_p12) target bundleno = 624 (0x270), region = 28  ;;  %s189_s4 = sand.u32 (!%p1281_p12), 1, %s1066_s13  }
  0x5d   : > { %s667_s22 = sshll.u32 (!%p1281_p12), %s189_s4, 4  ;;  %s190_s0 = scalar_lea.sflag (!%p1281_p12), [#allocation3], %s189_s4 }
  0x5e   : > { %s1322_s18 = scalar_lea.vmem (!%p1281_p12), [#allocation2], %s667_s22  ;;  %p1546_p7 = scmp.ne.s32.totalorder (!%p1281_p12), %s1540_s28, 0 }
  0x63   : > { %1037 = dma.done.wait (%p1546_p7), %s190_s0, 256  }
  0x64   : > { %1039 = vsyncadd (%p1546_p7), %s190_s0, 4294967040  ;;  %s668_s27 = sshll.u32 %s189_s4, 5  ;;  %s199_s5 = scalar_lea.sflag [#allocation6], %s189_s4 }
  0x65   : > { %s1328_s12 = scalar_lea.vmem [#allocation5], %s668_s27 }
  0x66   : > { %1041 = dma.done.wait (%p1546_p7), %s199_s5, 512  }
  0x67   : > { %1043 = vsyncadd (%p1546_p7), %s199_s5, 4294966784  ;;  %s225_s17 = sand.u32 1, %s1054_s10   ;;  %p670_p3 = scmp.ne.s32.totalorder %s1074_s15, 0 }
  0x68   : > { %s669_s21 = sshll.u32 %s225_s17, 4  ;;  %v1102_v0 = vmov (!%p670_p3), 0.0  }
  0x69   : > { %s1337_s26 = scalar_lea.vmem [#allocation7], %s669_s21  ;;  %240 = sbr.rel (%p670_p3) target bundleno = 112 (0x70), region = 40 }
  0x6a   : > { %241 = vst [vmem:[%s1337_s26] sm:$0xff] (!%p670_p3), %v1102_v0  ;;  %242 = vst [vmem:[%s1337_s26 + $0x8] sm:$0xff] (!%p670_p3), %v1102_v0 }
  0x70 PF: > { %v243_v1 = vlaneseq  ;;  %v1103_v31 = vmov 0.0   ;;  %s1400_s15 = smov 0  }
  0x72   : > { %v244_v2 = vshrl.u32 %v243_v1, 7  ;;  %v247_v3 = vand.u32 127, %v243_v1 }
  0x74   : > { %v245_v4 = vadd.s32 8, %v244_v2  ;;  %v248_v5 = vsub.s32 %v244_v2, %v247_v3  ;;  %v263_v6 = vadd.s32 16, %v244_v2  ;;  %v264_v7 = vadd.s32 24, %v244_v2 }
  0x75   : > { %v265_v8 = vadd.s32 32, %v244_v2  ;;  %v266_v9 = vadd.s32 40, %v244_v2  ;;  %v267_v10 = vadd.s32 48, %v244_v2  ;;  %v268_v11 = vadd.s32 56, %v244_v2 }
  0x76   : > { %v249_v12 = vsub.s32 %v245_v4, %v247_v3  ;;  %v251_v13 = vsub.s32 0, %v248_v5  ;;  %v269_v14 = vadd.s32 64, %v244_v2  ;;  %v270_v15 = vadd.s32 72, %v244_v2 }
  0x77   : > { %v271_v16 = vadd.s32 80, %v244_v2  ;;  %v272_v17 = vadd.s32 88, %v244_v2  ;;  %v273_v18 = vadd.s32 96, %v244_v2  ;;  %v274_v19 = vadd.s32 104, %v244_v2 }
  0x78   : > { %v1342_v20 = vmin.u32 %v251_v13, %v248_v5  ;;  %v254_v21 = vsub.s32 0, %v249_v12  ;;  %v275_v22 = vadd.s32 112, %v244_v2  ;;  %v276_v23 = vadd.s32 120, %v244_v2 }
  0x79   : > { %v277_v24 = vsub.s32 %v263_v6, %v247_v3  ;;  %v278_v25 = vsub.s32 %v264_v7, %v247_v3  ;;  %v279_v26 = vsub.s32 %v265_v8, %v247_v3  ;;  %v280_v27 = vsub.s32 %v266_v9, %v247_v3 }
  0x7a   : > { %v1344_v28 = vmin.u32 %v254_v21, %v249_v12  ;;  %vm1532_vm0 = vcmp.le.s32.totalorder %v1342_v20, 4  ;;  %v281_v29 = vsub.s32 %v267_v10, %v247_v3  ;;  %v282_v30 = vsub.s32 %v268_v11, %v247_v3 }
  0x7b   : > { %v1349_v32 = vsel %vm1532_vm0, 1.0, %v1103_v31  ;;  %v283_v33 = vsub.s32 %v269_v14, %v247_v3  ;;  %v284_v34 = vsub.s32 %v270_v15, %v247_v3  ;;  %v285_v35 = vsub.s32 %v271_v16, %v247_v3 }
  0x7c   : > { %vm1533_vm1 = vcmp.le.s32.totalorder %v1344_v28, 4  ;;  %v286_v36 = vsub.s32 %v272_v17, %v247_v3  ;;  %v287_v37 = vsub.s32 %v273_v18, %v247_v3  ;;  %v288_v38 = vsub.s32 %v274_v19, %v247_v3 }
  0x7d   : > { %v1354_v39 = vsel %vm1533_vm1, 1.0, %v1103_v31  ;;  %v289_v40 = vsub.s32 %v275_v22, %v247_v3  ;;  %v290_v41 = vsub.s32 %v276_v23, %v247_v3  ;;  %v292_v42 = vsub.s32 0, %v277_v24 }
  0x7e   : > { %v262_v43 = vpack.c.bf16 %v1354_v39, %v1349_v32  ;;  %v295_v44 = vsub.s32 0, %v278_v25  ;;  %v298_v45 = vsub.s32 0, %v279_v26  ;;  %v301_v46 = vsub.s32 0, %v280_v27 }
  0x7f   : > { %v1358_v47 = vmin.u32 %v292_v42, %v277_v24  ;;  %v304_v48 = vsub.s32 0, %v281_v29  ;;  %v307_v49 = vsub.s32 0, %v282_v30  ;;  %v310_v50 = vsub.s32 0, %v283_v33 }
  0x80   : > { %v1360_v51 = vmin.u32 %v295_v44, %v278_v25  ;;  %v1362_v52 = vmin.u32 %v298_v45, %v279_v26  ;;  %v1364_v53 = vmin.u32 %v301_v46, %v280_v27  ;;  %v313_v54 = vsub.s32 0, %v284_v34 }
  0x81   : > { %v1366_v55 = vmin.u32 %v304_v48, %v281_v29  ;;  %v1368_v56 = vmin.u32 %v307_v49, %v282_v30  ;;  %v1370_v57 = vmin.u32 %v310_v50, %v283_v33  ;;  %v316_v58 = vsub.s32 0, %v285_v35 }
  0x82   : > { %v1372_v59 = vmin.u32 %v313_v54, %v284_v34  ;;  %v319_v60 = vsub.s32 0, %v286_v36  ;;  %v322_v61 = vsub.s32 0, %v287_v37  ;;  %v325_v62 = vsub.s32 0, %v288_v38 }
  0x83   : > { %v1374_v63 = vmin.u32 %v316_v58, %v285_v35  ;;  %v328_v0 = vsub.s32 0, %v289_v40  ;;  %v331_v1 = vsub.s32 0, %v290_v41  ;;  %vm333_vm2 = vcmp.le.s32.totalorder %v1358_v47, 4 }
  0x84   : > { %v1377_v2 = vmin.u32 %v319_v60, %v286_v36  ;;  %v1379_v3 = vmin.u32 %v322_v61, %v287_v37  ;;  %v1381_v4 = vmin.u32 %v325_v62, %v288_v38  ;;  %vm334_vm3 = vcmp.le.s32.totalorder %v1360_v51, 4 }
  0x85   : > { %v1384_v5 = vmin.u32 %v328_v0, %v289_v40  ;;  %v1386_v6 = vmin.u32 %v331_v1, %v290_v41  ;;  %vm335_vm4 = vcmp.le.s32.totalorder %v1362_v52, 4  ;;  %vm336_vm5 = vcmp.le.s32.totalorder %v1364_v53, 4 }
  0x86   : > { %vm337_vm6 = vcmp.le.s32.totalorder %v1366_v55, 4  ;;  %vm338_vm7 = vcmp.le.s32.totalorder %v1368_v56, 4  ;;  %vm339_vm8 = vcmp.le.s32.totalorder %v1370_v57, 4  ;;  %vm340_vm9 = vcmp.le.s32.totalorder %v1372_v59, 4 }
  0x87   : > { %vm341_vm10 = vcmp.le.s32.totalorder %v1374_v63, 4  ;;  %vm344_vm13 = vcmp.le.s32.totalorder %v1381_v4, 4  ;;  %vm345_vm14 = vcmp.le.s32.totalorder %v1384_v5, 4 }
  0x88 LB: >> { %vm1547_vm0 = vcmp.le.s32.totalorder %v1342_v20, 4  ;;  %vm1548_vm1 = vcmp.le.s32.totalorder %v1344_v28, 4  ;;  %v1104_v7 = vmov 0.0   ;;  %vm1105_vm12 = vmmov 0   ;;  %vm709_vm15 = vmpackc.low %vm334_vm3, %vm333_vm2  ;;  %s733_s28 = sshll.u32 %s1094_s15, 3  ;;  %s705_s30 = sshll.u32 %s1094_s15, 4  ;;  %s1094_s15 = sphi %s1400_s15, %s387_s15  }
  0x89   : >> { %vm707_vm11 = vmpackc.low %vm1548_vm1, %vm1547_vm0  ;;  %746 = vmatprep.subr.bf16.mxu0 %v1104_v7  ;;  %762 = vmatprep.mubr.msk.bf16.mxu0 %vm1105_vm12, %v1104_v7  ;;  %v1106_v8 = vmov 1.0|1.0   ;;  %vm1550_vm1 = vcmp.le.s32.totalorder %v1379_v3, 4  ;;  %s390_s23 = scalar_lea.vmem %s1322_s18, %s733_s28 [#allocation2]  ;;  %s394_s20 = scalar_lea.vmem %s1328_s12, %s705_s30 [#allocation5]  ;;  %v1107_v18 = vmov 0   ;;  %v508_v35 = vld [vmem:[%s1337_s26] sm:$0xff]  ;;  %v509_v42 = vld [vmem:[%s1337_s26 + $0x8] sm:$0xff] }
  0x8a   : >> { %747 = vmatpush3.bf16.msk.msra.mxu0 %vm707_vm11, %v1106_v8  ;;  %766 = vmatprep.subr.bf16.mxu1 %v1104_v7  ;;  %vm711_vm0 = vmpackc.low %vm336_vm5, %vm335_vm4  ;;  %v391_v9 = vld [vmem:[%s390_s23] sm:$0xf]  ;;  %v392_v10 = vld [vmem:[%s390_s23 + $0x4] sm:$0xf]  ;;  %s387_s15 = sadd.s32 1, %s1094_s15  }
  0x8b   : >> { %748 = vmatprep.subr.bf16.mxu0 %v1104_v7  ;;  %768 = vmatprep.mubr.msk.bf16.mxu1 %vm1105_vm12, %v1104_v7  ;;  %vm713_vm11 = vmpackc.low %vm338_vm7, %vm337_vm6  ;;  %v706_v11 = vcombine.low %v391_v9, %v392_v10  ;;  %v395_v17 = vld [vmem:[%s394_s20] sm:$0xff]  ;;  %v396_v21 = vld [vmem:[%s394_s20 + $0x8] sm:$0xff]  ;;  %p384_p6 = scmp.ge.s32.totalorder %s387_s15, 2  }
  0x8c   : >> { %vm715_vm12 = vmpackc.low %vm340_vm9, %vm339_vm8  ;;  %v492_v23 = vsub.f32 1.0, %v395_v17  ;;  %v493_v25 = vsub.f32 1.0, %v396_v21  ;;  %s734_s29 = sshll.u32 (%p384_p6), %s1078_s16, 8  ;;  %s528_s22 = sshll.u32 (%p384_p6), %s1337_s26, 4  ;;  %s1458_s22 = int_to_ptr.vmem [resolvable:$true] %s528_s22 }
  0x8d   : > { %s1455_s4 = scalar_lea.hbm (%p384_p6), %s1525_s2, %s734_s29  ;;  %s1462_s0 = scalar_lea.sflag (%p384_p6), [#allocation4], %s225_s17 }
  0x8e   : >> { %749 = vmatpush3.bf16.msk.msra.mxu0 %vm709_vm15, %v1106_v8  ;;  %vm1549_vm15 = vcmp.le.s32.totalorder %v1377_v2, 4  ;;  %v494_v29 = vmul.f32 4.0, %v492_v23  ;;  %v495_v36 = vmul.f32 4.0, %v493_v25  ;;  %s960_s27 = scalar_lea.vmem (%p384_p6), %s1458_s22, 256  ;;  %p1552_p1 = scmp.ne.s32.totalorder (%p384_p6), %s1541_s8, 0 }
  0x8f   : >> { %750 = vmatprep.subr.bf16.mxu0 %v1104_v7  ;;  %p961_p12 = scmp.ne.s32.totalorder (%p384_p6), %s1458_s22, %s960_s27  ;;  %s1108_s16 = smov (%p384_p6), [#allocation7]  }
  0x90   : > { %s964_s18 = sshll.u32 (%p384_p6), %s1108_s16, 4  ;;  %s965_s18 = int_to_ptr.vmem [resolvable:$false] %s964_s18 }
  0x91   : > { %p962_p10 = pnand (%p384_p6), %p961_p12, %p1552_p1  ;;  %s966_s5 = scalar_lea.vmem (%p384_p6), %s965_s18, 512 }
  0x92   : >> { %751 = vmatpush3.bf16.msk.msra.mxu0 %vm711_vm0, %v1106_v8  ;;  %vm717_vm0 = vmpackc.low %vm1549_vm15, %vm341_vm10  ;;  %p967_p9 = scmp.lt.s32.totalorder (%p384_p6), %s1458_s22, %s965_s18  ;;  %p968_p13 = scmp.lt.s32.totalorder (%p384_p6), %s966_s5, %s960_s27 }
  0x93   : >> { %752 = vmatprep.subr.bf16.mxu0 %v1104_v7  ;;  %p963_p11 = pneg (%p384_p6), %p962_p10 }
  0x94   : > { %p969_p2 = por (%p384_p6), %p968_p13, %p967_p9 }
  0x96   : >> { %753 = vmatpush3.bf16.msk.msra.mxu0 %vm713_vm11, %v1106_v8  ;;  %vm719_vm11 = vmpackc.low %vm344_vm13, %vm1550_vm1  ;;  %vm445_vm1 = vcmask 130048   ;;  %p970_p0 = pnand (%p384_p6), %p969_p2, %p963_p11 }
  0x97   : >> { %754 = vmatprep.subr.bf16.mxu0 %v1104_v7 }
  0x9a   : >> { %755 = vmatpush3.bf16.msk.msra.mxu0 %vm715_vm12, %v1106_v8  ;;  %vm1551_vm12 = vcmp.le.s32.totalorder %v1386_v6, 4 }
  0x9b   : >> { %756 = vmatprep.subr.bf16.mxu0 %v1104_v7  ;;  %vm721_vm15 = vmpackc.low %vm1551_vm12, %vm345_vm14 }
  0x9e   : >> { %757 = vmatpush3.bf16.msk.msra.mxu0 %vm717_vm0, %v1106_v8  ;;  %vm490_vm0 = vcmp.gt.bf16.partialorder %v391_v9, 0 }
  0x9f   : >> { %758 = vmatprep.subr.bf16.mxu0 %v1104_v7  ;;  %v500_v19 = vsel %vm490_vm0, 65537, %v1107_v18 }
  0xa0   : >> { %v502_v24 = vunpack.c.l.b16 %v500_v19 }
  0xa2   : >> { %759 = vmatpush3.bf16.msk.msra.mxu0 %vm719_vm11, %v1106_v8  ;;  %vm491_vm11 = vcmp.gt.bf16.partialorder %v392_v10, 0  ;;  %vm504_vm12 = vcmp.ne.s32.totalorder %v502_v24, 0 }
  0xa3   : >> { %760 = vmatprep.subr.bf16.mxu0 %v1104_v7  ;;  %v501_v22 = vsel %vm491_vm11, 65537, %v1107_v18 }
  0xa4   : >> { %v503_v26 = vunpack.c.l.b16 %v501_v22 }
  0xa6   : >> { %761 = vmatpush3.bf16.msk.msra.mxu0 %vm721_vm15, %v1106_v8  ;;  %vm505_vm15 = vcmp.ne.s32.totalorder %v503_v26, 0 }
  0xa9   : >> { %763 = vmatmul.mubr.bf16.vlgmr.msra.gmra.mrb[0].mxu0 %v706_v11 }
 0x17c   : >> { %v437_v12 = vpop.f32.mrb[0].mxu0 }
 0x17d   : >> { %v764_v13 = vpop.f32.mrb[1].mxu0 }
 0x17e   : >> { %v440_v14 = vpop.f32.mrb[2].mxu0 }
 0x17f   : >> { %v444_v15 = vpack.c.bf16 %v440_v14, %v437_v12  ;;  %v765_v16 = vpop.f32.mrb[3].mxu0 }
 0x181   : >> { %767 = vmatpush3.bf16.msra.mxu1 %v444_v15 }
 0x184   : >> { %769 = vmatmul.mubr.msk.bf16.vlgmr.msra.gmra.mrb[0].mxu1 %vm445_vm1, %v262_v43 }
 0x257   : >> { %v483_v27 = vpop.f32.mrb[0].mxu1 }
 0x258   : >> { %v496_v30 = vsub.f32 81.0, %v483_v27  ;;  %v770_v31 = vpop.f32.mrb[1].mxu1 }
 0x259   : >> { %v486_v33 = vpop.f32.mrb[2].mxu1 }
 0x25a   : >> { %v498_v34 = vmul.f32 %v496_v30, %v395_v17  ;;  %v497_v37 = vsub.f32 81.0, %v486_v33  ;;  %v771_v38 = vpop.f32.mrb[3].mxu1 }
 0x25b   : > { %386 = sbr.rel (!%p384_p6) target bundleno = 136 (0x88), region = 99 }
 0x25c   : >> { %v506_v40 = vsel %vm504_vm12, %v494_v29, %v498_v34  ;;  %v499_v41 = vmul.f32 %v497_v37, %v396_v21 }
 0x25d   : >> { %v510_v44 = vadd.f32 %v508_v35, %v506_v40 }
 0x25e   : >> { %v507_v45 = vsel %vm505_vm15, %v495_v36, %v499_v41 }
 0x25f   : >> { %512 = vst [vmem:[%s1337_s26] sm:$0xff] %v510_v44  ;;  %v511_v46 = vadd.f32 %v509_v42, %v507_v45 }
 0x261   : >> { %513 = vst [vmem:[%s1337_s26 + $0x8] sm:$0xff] %v511_v46 }
 0x262   : > { %973 = shalt.err (!%p970_p0)
}
 0x263   : > { %s974_s12 = scalar_lea.hbm %s1455_s4, 256  ;;  %s978_s26 = scalar_lea.hbm %s1525_s2, 512 }
 0x264   : > { %p975_p4 = scmp.ne.s32.totalorder %s1455_s4, %s974_s12  ;;  %p979_p7 = scmp.lt.u32.totalorder %s1455_s4, %s1525_s2 }
 0x265   : > { %p980_p3 = scmp.lt.u32.totalorder %s978_s26, %s974_s12  ;;  %p982_p12 = scmp.lt.u32.totalorder %s974_s12, %s1455_s4 }
 0x266   : > { %p976_p8 = pnand %p975_p4, %p1552_p1 }
 0x267   : > { %p981_p6 = por %p980_p3, %p979_p7 }
 0x268   : > { %p977_p5 = pneg %p976_p8 }
 0x269   : > { %p983_p10 = por %p982_p12, %p981_p6 }
 0x26b   : > { %p984_p11 = pnand %p983_p10, %p977_p5 }
 0x26d   : > { %987 = shalt.err (!%p984_p11)
}
 0x26e   : > { %s1109_s23 = smov 128   ;;  %s1110_s30 = smov 8  }
 0x26f   : > { %776 = dma.vmem_to_hbm [thread:$0]  (%p1552_p1), %s1458_s22, 256, %s1455_s4, %s1462_s0, %s1109_s23, %s1109_s23, %s1110_s30  }
 0x270 PF: > { %p790_p9 = scmp.ge.s32.totalorder %s1090_s19, 2  ;;  %s543_s20 = sand.u32 1, %s1050_s9  }
 0x271   : > { %p1553_p13 = scmp.ne.s32.totalorder %s1542_s24, 0  ;;  %s544_s29 = scalar_lea.sflag [#allocation4], %s543_s20 }
 0x273   : > { %p786_p2 = pnand %p790_p9, %p1553_p13 }
 0x275   : > { %1045 = dma.done.wait (!%p786_p2), %s544_s29, 256  }
 0x276   : > { %1047 = vsyncadd (!%p786_p2), %s544_s29, 4294967040  ;;  %s21_s19 = sadd.s32 1, %s1090_s19   ;;  %s1554_s15 = sld [smem:[#allocation11_spill]] }
 0x277   : > { %p18_p0 = scmp.ge.s32.totalorder %s21_s19, 6   ;;  %s1555_s16 = sld [smem:[#allocation12_spill]] }
 0x278   : > { %s1556_s17 = sld [smem:[#allocation13_spill]]  ;;  %s1557_s18 = sld [smem:[#allocation14_spill]] }
 0x279   : > { %s1558_s9 = smov %s1054_s10  ;;  %s1559_s10 = smov %s1058_s11 }
 0x27a   : > { %s1560_s11 = smov %s1214_s6  ;;  %s1561_s12 = smov %s1066_s13 }
 0x27b   : > { %s1562_s13 = smov %s1070_s14  ;;  %s1563_s14 = smov %s1217_s7 }
 0x27c   :  { %20 = sbr.rel (!%p18_p0) target bundleno = 13 (0xd), region = 110 }
 0x283   :  { %549 = vsyncpa [#allocation3], 1 }
 0x284   :  { %551 = vsyncpa [#allocation3 + $0x1], 1 }
 0x285   :  { %552 = vsyncpa [#allocation6], 1 }
 0x286   :  { %554 = vsyncpa [#allocation6 + $0x1], 1 }
 0x287   :  { %555 = vsyncpa [#allocation4], 1 }
 0x288   :  { %557 = vsyncpa [#allocation4 + $0x1], 1 }

</bundles_post_ra>
